<compile_context>
chip_gen: v7x
topology: tpu7x:2x2x1
jax: 0.10.0
libtpu: 0.0.40
codegen_flags: <defaults>
</compile_context>

<pallas_src>
import jax
import jax.numpy as jnp
from jax.experimental import pallas as pl
from jax.experimental.pallas import tpu as pltpu


def policy_mlp_kernel(x_ref, w1_ref, b1_ref, w2_ref, b2_ref, w3_ref, b3_ref, o_ref):
    # layer 1 + ReLU (K = padded n_obs; f32 accumulation on the MXU)
    h1 = jnp.dot(x_ref[...], w1_ref[...], preferred_element_type=jnp.float32)
    h1 = jnp.maximum(h1 + b1_ref[...], 0.0)
    # layer 2 + ReLU
    h2 = jnp.dot(h1.astype(w2_ref.dtype), w2_ref[...], preferred_element_type=jnp.float32)
    h2 = jnp.maximum(h2 + b2_ref[...], 0.0)
    # layer 3 (logits). Padded action columns carry a -1e30 bias -> exp underflows to 0,
    # so softmax over the padded (lane-dense) block equals softmax over real actions.
    logits = jnp.dot(h2.astype(w3_ref.dtype), w3_ref[...], preferred_element_type=jnp.float32)
    logits = logits + b3_ref[...]
    # numerically stable softmax along lanes (exact division: keeps rows summing to 1)
    m = jnp.max(logits, axis=-1, keepdims=True)
    e = jnp.exp(logits - m)
    s = jnp.sum(e, axis=-1, keepdims=True)
    o_ref[...] = e / s


def _round_up(x, m):
    return ((x + m - 1) // m) * m


def policy_network_forward(x, params, *, block_b=512, use_bf16=False):
    """x: (B, n_obs) float32. params: dict with w1,b1,w2,b2,w3,b3 (W stored as (in,out))."""
    B, n_obs = x.shape
    hidden = params["w1"].shape[1]
    n_act = params["w3"].shape[1]

    # Lane-dense padding of feature dims + batch padding to a multiple of the tile.
    n_obs_p = _round_up(n_obs, 128)
    n_act_p = _round_up(n_act, 128)
    TB = block_b if B >= block_b else _round_up(B, 8)
    B_p = _round_up(B, TB)

    xp = jnp.zeros((B_p, n_obs_p), jnp.float32).at[:B, :n_obs].set(x.astype(jnp.float32))
    w1 = jnp.zeros((n_obs_p, hidden), jnp.float32).at[:n_obs, :].set(params["w1"])
    b1 = params["b1"].reshape(1, hidden).astype(jnp.float32)
    w2 = params["w2"].astype(jnp.float32)
    b2 = params["b2"].reshape(1, hidden).astype(jnp.float32)
    w3 = jnp.zeros((hidden, n_act_p), jnp.float32).at[:, :n_act].set(params["w3"])
    b3 = jnp.full((1, n_act_p), -1e30, jnp.float32).at[:, :n_act].set(
        params["b3"].reshape(1, n_act).astype(jnp.float32))

    if use_bf16:
        # bf16 operands into the MXU (f32 accumulate); biases / elementwise stay f32.
        xp = xp.astype(jnp.bfloat16)
        w1 = w1.astype(jnp.bfloat16)
        w2 = w2.astype(jnp.bfloat16)
        w3 = w3.astype(jnp.bfloat16)

    itemsize = xp.dtype.itemsize
    cost = pl.CostEstimate(
        flops=2 * B_p * (n_obs_p * hidden + hidden * hidden + hidden * n_act_p),
        transcendentals=B_p * n_act_p,  # exp
        bytes_accessed=(xp.size * itemsize
                        + (w1.size + w2.size + w3.size) * itemsize
                        + (b1.size + b2.size + b3.size) * 4
                        + B_p * n_act_p * 4),
    )

    out = pl.pallas_call(
        policy_mlp_kernel,
        out_shape=jax.ShapeDtypeStruct((B_p, n_act_p), jnp.float32),
        grid=(B_p // TB,),
        in_specs=[
            pl.BlockSpec((TB, n_obs_p), lambda i: (i, 0)),       # x tile (pipelined)
            pl.BlockSpec((n_obs_p, hidden), lambda i: (0, 0)),   # w1 (VMEM-resident)
            pl.BlockSpec((1, hidden), lambda i: (0, 0)),         # b1
            pl.BlockSpec((hidden, hidden), lambda i: (0, 0)),    # w2
            pl.BlockSpec((1, hidden), lambda i: (0, 0)),         # b2
            pl.BlockSpec((hidden, n_act_p), lambda i: (0, 0)),   # w3
            pl.BlockSpec((1, n_act_p), lambda i: (0, 0)),        # b3
        ],
        out_specs=pl.BlockSpec((TB, n_act_p), lambda i: (i, 0)),
        compiler_params=pltpu.CompilerParams(dimension_semantics=("parallel",)),
        cost_estimate=cost,
    )(xp, w1, b1, w2, b2, w3, b3)

    return out[:B, :n_act]


def init_params(key, n_observations, n_actions, hidden=128):
    """Deterministic init mimicking PyTorch nn.Linear default U(-1/sqrt(fan_in), 1/sqrt(fan_in))."""
    keys = jax.random.split(key, 6)

    def linear(kw, kb, fan_in, fan_out):
        bound = 1.0 / jnp.sqrt(fan_in)
        w = jax.random.uniform(kw, (fan_in, fan_out), jnp.float32, -bound, bound)
        b = jax.random.uniform(kb, (1, fan_out), jnp.float32, -bound, bound)
        return w, b

    w1, b1 = linear(keys[0], keys[1], n_observations, hidden)
    w2, b2 = linear(keys[2], keys[3], hidden, hidden)
    w3, b3 = linear(keys[4], keys[5], hidden, n_actions)
    return {"w1": w1, "b1": b1, "w2": w2, "b2": b2, "w3": w3, "b3": b3}


def _reference(x, params):
    h1 = jnp.maximum(x @ params["w1"] + params["b1"], 0.0)
    h2 = jnp.maximum(h1 @ params["w2"] + params["b2"], 0.0)
    return jax.nn.softmax(h2 @ params["w3"] + params["b3"], axis=-1)


# TODO(synk): optim.Adam / training step is not part of forward and is not translated.

if __name__ == "__main__":
    key = jax.random.PRNGKey(0)
    k_params, k_x = jax.random.split(key)

    batch = 8
    n_observations = 4
    n_actions = 4

    params = init_params(k_params, n_observations, n_actions)
    x = jax.random.normal(k_x, (batch, n_observations), dtype=jnp.float32)

    # Small-batch path (single tile).
    out = jax.block_until_ready(policy_network_forward(x, params))
    assert out.shape == (batch, n_actions)
    assert jnp.allclose(jnp.sum(out, axis=-1), 1.0, atol=2e-3), "rows do not sum to 1"
    assert jnp.allclose(out, _reference(x, params), atol=2e-3), "mismatch vs reference (small)"

    # Larger batch: exercises the tiled grid (TB=512, padded to 1024 rows, 2 grid steps,
    # parallel batch axis -> megacore sharding on v7x).
    xb = jax.random.normal(jax.random.PRNGKey(1), (1000, n_observations), dtype=jnp.float32)
    refb = _reference(xb, params)
    outb = jax.block_until_ready(policy_network_forward(xb, params, block_b=512))
    assert outb.shape == (1000, n_actions)
    assert jnp.allclose(jnp.sum(outb, axis=-1), 1.0, atol=2e-3)
    assert jnp.allclose(outb, refb, atol=2e-3), "mismatch vs reference (tiled)"

    # Optional bf16-weights path (f32 accumulation) — looser tolerance by construction.
    outbf = jax.block_until_ready(policy_network_forward(xb, params, block_b=512, use_bf16=True))
    assert jnp.allclose(jnp.sum(outbf, axis=-1), 1.0, atol=2e-3)
    assert jnp.allclose(outbf, refb, atol=5e-2), "mismatch vs reference (bf16)"

    print("KERNEL_OK")
</pallas_src>

<mosaic_0001>
module attributes {stable_mosaic.version = 11 : i64} {
  func.func @policy_mlp_kernel(%arg0: i32, %arg1: memref<8x128xf32, #tpu.memory_space<vmem>>, %arg2: memref<128x128xf32, #tpu.memory_space<vmem>>, %arg3: memref<1x128xf32, #tpu.memory_space<vmem>>, %arg4: memref<128x128xf32, #tpu.memory_space<vmem>>, %arg5: memref<1x128xf32, #tpu.memory_space<vmem>>, %arg6: memref<128x128xf32, #tpu.memory_space<vmem>>, %arg7: memref<1x128xf32, #tpu.memory_space<vmem>>, %arg8: memref<8x128xf32, #tpu.memory_space<vmem>>) attributes {dimension_semantics = [#tpu.dimension_semantics<parallel>], iteration_bounds = array<i64: 1>, scalar_prefetch = 0 : i64, scratch_operands = 0 : i64, tpu.core_type = #tpu.core_type<tc>, window_params = [{transform_indices = @transform_0, window_bounds = array<i64: 8, 128>}, {pipeline_mode = #tpu.pipeline_mode<synchronous>, transform_indices = @transform_1, window_bounds = array<i64: 128, 128>}, {pipeline_mode = #tpu.pipeline_mode<synchronous>, transform_indices = @transform_2, window_bounds = array<i64: 1, 128>}, {pipeline_mode = #tpu.pipeline_mode<synchronous>, transform_indices = @transform_3, window_bounds = array<i64: 128, 128>}, {pipeline_mode = #tpu.pipeline_mode<synchronous>, transform_indices = @transform_4, window_bounds = array<i64: 1, 128>}, {pipeline_mode = #tpu.pipeline_mode<synchronous>, transform_indices = @transform_5, window_bounds = array<i64: 128, 128>}, {pipeline_mode = #tpu.pipeline_mode<synchronous>, transform_indices = @transform_6, window_bounds = array<i64: 1, 128>}, {transform_indices = @transform_7, window_bounds = array<i64: 8, 128>}]} {
    %c0 = arith.constant 0 : index
    %c0_0 = arith.constant 0 : index
    %0 = vector.load %arg1[%c0, %c0_0] : memref<8x128xf32, #tpu.memory_space<vmem>>, vector<8x128xf32>
    %c0_1 = arith.constant 0 : index
    %c0_2 = arith.constant 0 : index
    %1 = vector.load %arg2[%c0_1, %c0_2] : memref<128x128xf32, #tpu.memory_space<vmem>>, vector<128x128xf32>
    %cst = arith.constant dense<0.000000e+00> : vector<8x128xf32>
    %2 = tpu.matmul %0, %1, %cst {dimension_numbers = #tpu.dot_dimension_numbers<[1], [0], [0], [1], [0, 0, 1, 1], [], []>} : vector<8x128xf32>, vector<128x128xf32>, vector<8x128xf32> -> vector<8x128xf32>
    %c0_3 = arith.constant 0 : index
    %c0_4 = arith.constant 0 : index
    %3 = vector.load %arg3[%c0_3, %c0_4] : memref<1x128xf32, #tpu.memory_space<vmem>>, vector<1x128xf32>
    %4 = vector.broadcast %3 : vector<1x128xf32> to vector<8x128xf32>
    %5 = arith.addf %2, %4 : vector<8x128xf32>
    %cst_5 = arith.constant 0.000000e+00 : f32
    %6 = vector.broadcast %cst_5 : f32 to vector<8x128xf32>
    %7 = arith.maximumf %5, %6 : vector<8x128xf32>
    %c0_6 = arith.constant 0 : index
    %c0_7 = arith.constant 0 : index
    %8 = vector.load %arg4[%c0_6, %c0_7] : memref<128x128xf32, #tpu.memory_space<vmem>>, vector<128x128xf32>
    %cst_8 = arith.constant dense<0.000000e+00> : vector<8x128xf32>
    %9 = tpu.matmul %7, %8, %cst_8 {dimension_numbers = #tpu.dot_dimension_numbers<[1], [0], [0], [1], [0, 0, 1, 1], [], []>} : vector<8x128xf32>, vector<128x128xf32>, vector<8x128xf32> -> vector<8x128xf32>
    %c0_9 = arith.constant 0 : index
    %c0_10 = arith.constant 0 : index
    %10 = vector.load %arg5[%c0_9, %c0_10] : memref<1x128xf32, #tpu.memory_space<vmem>>, vector<1x128xf32>
    %11 = vector.broadcast %10 : vector<1x128xf32> to vector<8x128xf32>
    %12 = arith.addf %9, %11 : vector<8x128xf32>
    %cst_11 = arith.constant 0.000000e+00 : f32
    %13 = vector.broadcast %cst_11 : f32 to vector<8x128xf32>
    %14 = arith.maximumf %12, %13 : vector<8x128xf32>
    %c0_12 = arith.constant 0 : index
    %c0_13 = arith.constant 0 : index
    %15 = vector.load %arg6[%c0_12, %c0_13] : memref<128x128xf32, #tpu.memory_space<vmem>>, vector<128x128xf32>
    %cst_14 = arith.constant dense<0.000000e+00> : vector<8x128xf32>
    %16 = tpu.matmul %14, %15, %cst_14 {dimension_numbers = #tpu.dot_dimension_numbers<[1], [0], [0], [1], [0, 0, 1, 1], [], []>} : vector<8x128xf32>, vector<128x128xf32>, vector<8x128xf32> -> vector<8x128xf32>
    %c0_15 = arith.constant 0 : index
    %c0_16 = arith.constant 0 : index
    %17 = vector.load %arg7[%c0_15, %c0_16] : memref<1x128xf32, #tpu.memory_space<vmem>>, vector<1x128xf32>
    %18 = vector.broadcast %17 : vector<1x128xf32> to vector<8x128xf32>
    %19 = arith.addf %16, %18 : vector<8x128xf32>
    %cst_17 = arith.constant dense<0xFF800000> : vector<8xf32>
    %20 = vector.multi_reduction <maximumf>, %19, %cst_17 [1] : vector<8x128xf32> to vector<8xf32>
    %21 = vector.shape_cast %20 : vector<8xf32> to vector<8x1xf32>
    %22 = vector.broadcast %21 : vector<8x1xf32> to vector<8x128xf32>
    %23 = arith.subf %19, %22 : vector<8x128xf32>
    %24 = math.exp %23 : vector<8x128xf32>
    %cst_18 = arith.constant dense<0.000000e+00> : vector<8xf32>
    %25 = vector.multi_reduction <add>, %24, %cst_18 [1] : vector<8x128xf32> to vector<8xf32>
    %26 = vector.shape_cast %25 : vector<8xf32> to vector<8x1xf32>
    %27 = vector.broadcast %26 : vector<8x1xf32> to vector<8x128xf32>
    %28 = arith.divf %24, %27 : vector<8x128xf32>
    %c0_19 = arith.constant 0 : index
    %c0_20 = arith.constant 0 : index
    %29 = vector.load %arg8[%c0_19, %c0_20] : memref<8x128xf32, #tpu.memory_space<vmem>>, vector<8x128xf32>
    tpu.vector_store %arg8[%c0_19, %c0_20], %28 {strides = array<i32>} : memref<8x128xf32, #tpu.memory_space<vmem>>, vector<8x128xf32>,
    return
  }
  func.func @transform_0(%arg0: i32) -> (i32, i32) {
    %c0_i32 = arith.constant 0 : i32
    %c0_i32_0 = arith.constant 0 : i32
    return %arg0, %c0_i32 : i32, i32
  }
  func.func @transform_1(%arg0: i32) -> (i32, i32) {
    %c0_i32 = arith.constant 0 : i32
    %c0_i32_0 = arith.constant 0 : i32
    %c0_i32_1 = arith.constant 0 : i32
    return %c0_i32, %c0_i32_0 : i32, i32
  }
  func.func @transform_2(%arg0: i32) -> (i32, i32) {
    %c0_i32 = arith.constant 0 : i32
    %c0_i32_0 = arith.constant 0 : i32
    %c0_i32_1 = arith.constant 0 : i32
    return %c0_i32, %c0_i32_0 : i32, i32
  }
  func.func @transform_3(%arg0: i32) -> (i32, i32) {
    %c0_i32 = arith.constant 0 : i32
    %c0_i32_0 = arith.constant 0 : i32
    %c0_i32_1 = arith.constant 0 : i32
    return %c0_i32, %c0_i32_0 : i32, i32
  }
  func.func @transform_4(%arg0: i32) -> (i32, i32) {
    %c0_i32 = arith.constant 0 : i32
    %c0_i32_0 = arith.constant 0 : i32
    %c0_i32_1 = arith.constant 0 : i32
    return %c0_i32, %c0_i32_0 : i32, i32
  }
  func.func @transform_5(%arg0: i32) -> (i32, i32) {
    %c0_i32 = arith.constant 0 : i32
    %c0_i32_0 = arith.constant 0 : i32
    %c0_i32_1 = arith.constant 0 : i32
    return %c0_i32, %c0_i32_0 : i32, i32
  }
  func.func @transform_6(%arg0: i32) -> (i32, i32) {
    %c0_i32 = arith.constant 0 : i32
    %c0_i32_0 = arith.constant 0 : i32
    %c0_i32_1 = arith.constant 0 : i32
    return %c0_i32, %c0_i32_0 : i32, i32
  }
  func.func @transform_7(%arg0: i32) -> (i32, i32) {
    %c0_i32 = arith.constant 0 : i32
    %c0_i32_0 = arith.constant 0 : i32
    return %arg0, %c0_i32 : i32, i32
  }
}

</mosaic_0001>

<bundles_post_ra>
// kernel: tpu_custom_call.1
= control target key start
LH: loop header
LB: loop body
LE: loop exit
PB: predicated region body
PF: predicated region fallthrough
CT: control target
= control target key end

     0   :  { %12 = vsyncpa [#allocation3], 0  ;;  %s910_s0 = inlined_call_operand.hbm [shape: f32[8,128], index: 0, kind: input, shape index: {}]   ;;  %s911_s1 = inlined_call_operand.hbm [shape: f32[128,128], index: 1, kind: input, shape index: {}]   ;;  %s912_s2 = inlined_call_operand.vmem [shape: f32[1,128], index: 2, kind: input, shape index: {}]   ;;  %s913_s3 = inlined_call_operand.hbm [shape: f32[128,128], index: 3, kind: input, shape index: {}]   ;;  %s914_s4 = inlined_call_operand.vmem [shape: f32[1,128], index: 4, kind: input, shape index: {}]   ;;  %s915_s5 = inlined_call_operand.hbm [shape: f32[128,128], index: 5, kind: input, shape index: {}]   ;;  %s916_s6 = inlined_call_operand.vmem [shape: f32[1,128], index: 6, kind: input, shape index: {}]   ;;  %s917_s7 = inlined_call_operand.hbm [shape: f32[8,128], index: 7, kind: output, shape index: {}]  }
   0x1   :  { %13 = vsyncpa [#allocation6], 0 }
   0x2   :  { %14 = vsyncpa [#allocation9], 0 }
   0x3   :  { %15 = vsyncpa [#allocation4], 0  ;;  %s752_s24 = smov [#allocation5]   ;;  %s634_s28 = scalar_lea.hbm %s911_s1, 2048 }
   0x4   :  { %s31_s25 = sshll.u32 %s752_s24, 4  ;;  %p635_p0 = scmp.ne.s32.totalorder %s911_s1, %s634_s28  ;;  %s32_s25 = int_to_ptr.vmem [resolvable:$true] %s31_s25 }
   0x5   :  { %p638_p1 = scmp.lt.u32.totalorder %s634_s28, %s911_s1 }
   0x7   :  { %p640_p2 = pnand %p638_p1, %p635_p0 }
   0x9   :  { %643 = shalt.err (!%p640_p2)
}
   0xa   :  { %s644_s10 = scalar_lea.vmem %s32_s25, 2048  ;;  %p649_p4 = scmp.lt.s32.totalorder %s32_s25, %s32_s25 }
   0xb   :  { %p645_p3 = scmp.ne.s32.totalorder %s32_s25, %s644_s10  ;;  %p650_p5 = scmp.lt.s32.totalorder %s644_s10, %s644_s10 }
   0xd   :  { %p651_p6 = por %p650_p5, %p649_p4 }
   0xf   :  { %p652_p7 = pnand %p651_p6, %p645_p3 }
  0x11   :  { %655 = shalt.err (!%p652_p7)
}
  0x12   :  { %s753_s11 = smov 128   ;;  %s754_s12 = smov 8  }
  0x13   :  { %37 = dma.hbm_to_vmem [thread:$0]  %s911_s1, 2048, %s32_s25, [#allocation6], %s753_s11, %s753_s11, %s754_s12  }
  0x14   :  { %s755_s15 = smov [#allocation2]   ;;  %s756_s17 = smov [#allocation7]  }
  0x15   :  { %s22_s16 = sshll.u32 %s755_s15, 4  ;;  %s45_s18 = sshll.u32 %s756_s17, 4  ;;  %s23_s16 = int_to_ptr.vmem [resolvable:$true] %s22_s16  ;;  %s46_s18 = int_to_ptr.vmem [resolvable:$true] %s45_s18 }
  0x16   :  { %s656_s21 = scalar_lea.hbm %s910_s0, 128 }
  0x17   :  { %p657_p8 = scmp.ne.s32.totalorder %s910_s0, %s656_s21  ;;  %p660_p9 = scmp.lt.u32.totalorder %s656_s21, %s910_s0 }
  0x19   :  { %p662_p10 = pnand %p660_p9, %p657_p8 }
  0x1b   :  { %665 = shalt.err (!%p662_p10)
}
  0x1c   :  { %s666_s1 = scalar_lea.vmem %s23_s16, 128  ;;  %p671_p12 = scmp.lt.s32.totalorder %s23_s16, %s23_s16 }
  0x1d   :  { %p667_p11 = scmp.ne.s32.totalorder %s23_s16, %s666_s1  ;;  %p672_p13 = scmp.lt.s32.totalorder %s666_s1, %s666_s1 }
  0x1f   :  { %p673_p0 = por %p672_p13, %p671_p12 }
  0x21   :  { %p674_p1 = pnand %p673_p0, %p667_p11 }
  0x23   :  { %677 = shalt.err (!%p674_p1)
}
  0x24   :  { %25 = dma.hbm_to_vmem [thread:$0]  %s910_s0, 128, %s23_s16, [#allocation3]  }
  0x25   :  { %s678_s30 = scalar_lea.hbm %s913_s3, 2048 }
  0x26   :  { %p679_p2 = scmp.ne.s32.totalorder %s913_s3, %s678_s30  ;;  %p682_p3 = scmp.lt.u32.totalorder %s678_s30, %s913_s3 }
  0x28   :  { %p684_p4 = pnand %p682_p3, %p679_p2 }
  0x2a   :  { %687 = shalt.err (!%p684_p4)
}
  0x2b   :  { %s688_s14 = scalar_lea.vmem %s46_s18, 2048  ;;  %p693_p6 = scmp.lt.s32.totalorder %s46_s18, %s46_s18 }
  0x2c   :  { %p689_p5 = scmp.ne.s32.totalorder %s46_s18, %s688_s14  ;;  %p694_p7 = scmp.lt.s32.totalorder %s688_s14, %s688_s14 }
  0x2e   :  { %p695_p8 = por %p694_p7, %p693_p6 }
  0x30   :  { %p696_p9 = pnand %p695_p8, %p689_p5 }
  0x32   :  { %699 = shalt.err (!%p696_p9)
}
  0x33   :  { %51 = dma.hbm_to_vmem [thread:$0]  %s913_s3, 2048, %s46_s18, [#allocation6], %s753_s11, %s753_s11, %s754_s12  }
  0x34   :  { %s757_s16 = smov [#allocation8]   ;;  %s700_s21 = scalar_lea.hbm %s915_s5, 2048 }
  0x35   :  { %s59_s17 = sshll.u32 %s757_s16, 4  ;;  %p701_p10 = scmp.ne.s32.totalorder %s915_s5, %s700_s21  ;;  %s60_s17 = int_to_ptr.vmem [resolvable:$true] %s59_s17 }
  0x36   :  { %p704_p11 = scmp.lt.u32.totalorder %s700_s21, %s915_s5 }
  0x38   :  { %p706_p12 = pnand %p704_p11, %p701_p10 }
  0x3a   :  { %709 = shalt.err (!%p706_p12)
}
  0x3b   :  { %s710_s1 = scalar_lea.vmem %s60_s17, 2048  ;;  %p715_p0 = scmp.lt.s32.totalorder %s60_s17, %s60_s17 }
  0x3c   :  { %p711_p13 = scmp.ne.s32.totalorder %s60_s17, %s710_s1  ;;  %p716_p1 = scmp.lt.s32.totalorder %s710_s1, %s710_s1 }
  0x3e   :  { %p717_p2 = por %p716_p1, %p715_p0 }
  0x40   :  { %p718_p3 = pnand %p717_p2, %p711_p13 }
  0x42   :  { %721 = shalt.err (!%p718_p3)
}
  0x43   :  { %65 = dma.hbm_to_vmem [thread:$0]  %s915_s5, 2048, %s60_s17, [#allocation9], %s753_s11, %s753_s11, %s754_s12  }
  0x44   :  { %744 = dma.done.wait [#allocation3], 128  }
  0x45   :  { %745 = vsyncadd [#allocation3], 4294967168 }
  0x46   :  { %746 = dma.done.wait [#allocation6], 4096  }
  0x47   :  { %747 = vsyncadd [#allocation6], 4294963200 }
  0x48   :  { %748 = dma.done.wait [#allocation9], 2048  }
  0x49   :  { %749 = vsyncadd [#allocation9], 4294965248  ;;  %v758_v0 = vmov 0.0|0.0   ;;  %vm759_vm0 = vmmov 0   ;;  %v760_v1 = vmov 0.0   ;;  %v81_v2 = vld [vmem:[#allocation5] sm:$0xff] }
  0x4a   :  { %548 = vmatprep.subr.bf16.mxu0 %v758_v0  ;;  %475 = vmatprep.mubr.msk.f32.mxu0 %vm759_vm0, %v760_v1  ;;  %v82_v3 = vld [vmem:[#allocation5 + $0x8] sm:$0xff]  ;;  %v83_v4 = vld [vmem:[#allocation5 + $0x10] sm:$0xff]  ;;  %v84_v6 = vld [vmem:[#allocation5 + $0x18] sm:$0xff] }
  0x4b   :  { %572 = vmatprep.subr.bf16.mxu1 %v758_v0  ;;  %510 = vmatprep.mubr.msk.f32.mxu1 %vm759_vm0, %v760_v1  ;;  %v549_v5 = vpack.c.bf16 %v82_v3, %v81_v2  ;;  %v552_v7 = vpack.c.bf16 %v84_v6, %v83_v4  ;;  %v85_v8 = vld [vmem:[#allocation5 + $0x20] sm:$0xff]  ;;  %v86_v9 = vld [vmem:[#allocation5 + $0x28] sm:$0xff]  ;;  %v177_v12 = vld [vmem:[#allocation7 + $0x10] sm:$0xff] }
  0x4c   :  { %v175_v10 = vld [vmem:[#allocation7] sm:$0xff]  ;;  %v176_v11 = vld [vmem:[#allocation7 + $0x8] sm:$0xff]  ;;  %v178_v13 = vld [vmem:[#allocation7 + $0x18] sm:$0xff]  ;;  %v555_v14 = vpack.c.bf16 %v86_v9, %v85_v8 }
  0x4d   :  { %550 = vmatpush3.bf16.msra.mxu0 %v549_v5  ;;  %v573_v15 = vpack.c.bf16 %v176_v11, %v175_v10  ;;  %v87_v16 = vld [vmem:[#allocation5 + $0x30] sm:$0xff]  ;;  %v88_v17 = vld [vmem:[#allocation5 + $0x38] sm:$0xff]  ;;  %v576_v18 = vpack.c.bf16 %v178_v13, %v177_v12  ;;  %v179_v19 = vld [vmem:[#allocation7 + $0x20] sm:$0xff] }
  0x4e   :  { %551 = vmatprep.subr.bf16.mxu0 %v758_v0  ;;  %v180_v20 = vld [vmem:[#allocation7 + $0x28] sm:$0xff]  ;;  %v558_v21 = vpack.c.bf16 %v88_v17, %v87_v16  ;;  %v89_v22 = vld [vmem:[#allocation5 + $0x40] sm:$0xff]  ;;  %v181_v25 = vld [vmem:[#allocation7 + $0x30] sm:$0xff] }
  0x4f   :  { %574 = vmatpush3.bf16.msra.mxu1 %v573_v15  ;;  %v90_v23 = vld [vmem:[#allocation5 + $0x48] sm:$0xff]  ;;  %v579_v24 = vpack.c.bf16 %v180_v20, %v179_v19  ;;  %v182_v26 = vld [vmem:[#allocation7 + $0x38] sm:$0xff]  ;;  %v91_v28 = vld [vmem:[#allocation5 + $0x50] sm:$0xff] }
  0x50   :  { %575 = vmatprep.subr.bf16.mxu1 %v758_v0  ;;  %v561_v27 = vpack.c.bf16 %v90_v23, %v89_v22  ;;  %v92_v29 = vld [vmem:[#allocation5 + $0x58] sm:$0xff]  ;;  %v582_v30 = vpack.c.bf16 %v182_v26, %v181_v25  ;;  %v183_v31 = vld [vmem:[#allocation7 + $0x40] sm:$0xff]  ;;  %v184_v32 = vld [vmem:[#allocation7 + $0x48] sm:$0xff] }
  0x51   :  { %553 = vmatpush3.bf16.msra.mxu0 %v552_v7  ;;  %v564_v33 = vpack.c.bf16 %v92_v29, %v91_v28  ;;  %v93_v34 = vld [vmem:[#allocation5 + $0x60] sm:$0xff]  ;;  %v94_v35 = vld [vmem:[#allocation5 + $0x68] sm:$0xff]  ;;  %v585_v36 = vpack.c.bf16 %v184_v32, %v183_v31  ;;  %v185_v37 = vld [vmem:[#allocation7 + $0x50] sm:$0xff] }
  0x52   :  { %554 = vmatprep.subr.bf16.mxu0 %v758_v0  ;;  %v186_v38 = vld [vmem:[#allocation7 + $0x58] sm:$0xff]  ;;  %v567_v39 = vpack.c.bf16 %v94_v35, %v93_v34  ;;  %v95_v40 = vld [vmem:[#allocation5 + $0x70] sm:$0xff]  ;;  %v187_v43 = vld [vmem:[#allocation7 + $0x60] sm:$0xff] }
  0x53   :  { %577 = vmatpush3.bf16.msra.mxu1 %v576_v18  ;;  %v96_v41 = vld [vmem:[#allocation5 + $0x78] sm:$0xff]  ;;  %v588_v42 = vpack.c.bf16 %v186_v38, %v185_v37  ;;  %v188_v44 = vld [vmem:[#allocation7 + $0x68] sm:$0xff]  ;;  %v189_v48 = vld [vmem:[#allocation7 + $0x70] sm:$0xff] }
  0x54   :  { %578 = vmatprep.subr.bf16.mxu1 %v758_v0  ;;  %v570_v45 = vpack.c.bf16 %v96_v41, %v95_v40  ;;  %v591_v46 = vpack.c.bf16 %v188_v44, %v187_v43  ;;  %v80_v47 = vld [vmem:[#allocation2] sm:$0xff]  ;;  %v269_v51 = vld [vmem:[#allocation8] sm:$0xff]  ;;  %v270_v52 = vld [vmem:[#allocation8 + $0x8] sm:$0xff] }
  0x55   :  { %556 = vmatpush3.bf16.msra.mxu0 %v555_v14  ;;  %v190_v49 = vld [vmem:[#allocation7 + $0x78] sm:$0xff]  ;;  %v271_v53 = vld [vmem:[#allocation8 + $0x10] sm:$0xff]  ;;  %v597_v54 = vpack.c.bf16 %v270_v52, %v269_v51  ;;  %v273_v57 = vld [vmem:[#allocation8 + $0x20] sm:$0xff] }
  0x56   :  { %557 = vmatprep.subr.bf16.mxu0 %v758_v0  ;;  %v594_v50 = vpack.c.bf16 %v190_v49, %v189_v48  ;;  %v272_v55 = vld [vmem:[#allocation8 + $0x18] sm:$0xff]  ;;  %v274_v58 = vld [vmem:[#allocation8 + $0x28] sm:$0xff]  ;;  %v275_v60 = vld [vmem:[#allocation8 + $0x30] sm:$0xff] }
  0x57   :  { %580 = vmatpush3.bf16.msra.mxu1 %v579_v24  ;;  %v600_v56 = vpack.c.bf16 %v272_v55, %v271_v53  ;;  %v603_v59 = vpack.c.bf16 %v274_v58, %v273_v57  ;;  %v276_v61 = vld [vmem:[#allocation8 + $0x38] sm:$0xff]  ;;  %v277_v63 = vld [vmem:[#allocation8 + $0x40] sm:$0xff]  ;;  %v279_v3 = vld [vmem:[#allocation8 + $0x50] sm:$0xff] }
  0x58   :  { %581 = vmatprep.subr.bf16.mxu1 %v758_v0  ;;  %v606_v62 = vpack.c.bf16 %v276_v61, %v275_v60  ;;  %v280_v4 = vld [vmem:[#allocation8 + $0x58] sm:$0xff]  ;;  %v281_v6 = vld [vmem:[#allocation8 + $0x60] sm:$0xff]  ;;  %v282_v7 = vld [vmem:[#allocation8 + $0x68] sm:$0xff] }
  0x59   :  { %559 = vmatpush3.bf16.msra.mxu0 %v558_v21  ;;  %v612_v5 = vpack.c.bf16 %v280_v4, %v279_v3  ;;  %v615_v8 = vpack.c.bf16 %v282_v7, %v281_v6  ;;  %v389_v9 = vld [vmem:[%s912_s2] ss:$0 sm:$0xff]  ;;  %v283_v14 = vld [vmem:[#allocation8 + $0x70] sm:$0xff] }
  0x5a   :  { %560 = vmatprep.subr.bf16.mxu0 %v758_v0  ;;  %v284_v15 = vld [vmem:[#allocation8 + $0x78] sm:$0xff] }
  0x5b   :  { %583 = vmatpush3.bf16.msra.mxu1 %v582_v30  ;;  %v618_v16 = vpack.c.bf16 %v284_v15, %v283_v14  ;;  %v390_v17 = vld [vmem:[%s914_s4] ss:$0 sm:$0xff]  ;;  %s761_s4 = smov [#allocation10]  }
  0x5c   :  { %584 = vmatprep.subr.bf16.mxu1 %v758_v0  ;;  %v391_v21 = vld [vmem:[%s916_s6] ss:$0 sm:$0xff]  ;;  %s378_s28 = sshll.u32 %s761_s4, 4  ;;  %s379_s28 = int_to_ptr.vmem [resolvable:$true] %s378_s28 }
  0x5d   :  { %562 = vmatpush3.bf16.msra.mxu0 %v561_v27  ;;  %s722_s29 = scalar_lea.vmem %s379_s28, 128  ;;  %p727_p5 = scmp.lt.s32.totalorder %s379_s28, %s379_s28 }
  0x5e   :  { %563 = vmatprep.subr.bf16.mxu0 %v758_v0  ;;  %p723_p4 = scmp.ne.s32.totalorder %s379_s28, %s722_s29  ;;  %p728_p6 = scmp.lt.s32.totalorder %s722_s29, %s722_s29 }
  0x5f   :  { %586 = vmatpush3.bf16.msra.mxu1 %v585_v36 }
  0x60   :  { %587 = vmatprep.subr.bf16.mxu1 %v758_v0  ;;  %p729_p7 = por %p728_p6, %p727_p5 }
  0x61   :  { %565 = vmatpush3.bf16.msra.mxu0 %v564_v33 }
  0x62   :  { %566 = vmatprep.subr.bf16.mxu0 %v758_v0  ;;  %p730_p8 = pnand %p729_p7, %p723_p4 }
  0x63   :  { %589 = vmatpush3.bf16.msra.mxu1 %v588_v42 }
  0x64   :  { %590 = vmatprep.subr.bf16.mxu1 %v758_v0 }
  0x65   :  { %568 = vmatpush3.bf16.msra.mxu0 %v567_v39 }
  0x66   :  { %569 = vmatprep.subr.bf16.mxu0 %v758_v0 }
  0x67   :  { %592 = vmatpush3.bf16.msra.mxu1 %v591_v46 }
  0x68   :  { %593 = vmatprep.subr.bf16.mxu1 %v758_v0 }
  0x69   :  { %571 = vmatpush3.bf16.msra.mxu0 %v570_v45 }
  0x6a   :  { %596 = vmatprep.subr.bf16.mxu0 %v758_v0 }
  0x6b   :  { %595 = vmatpush3.bf16.msra.mxu1 %v594_v50 }
  0x6c   :  { %476 = vmatmul.mubr.f32.vlgmr.msra.gmra.mrb[0].mxu0 %v80_v47 }
  0x6d   :  { %545 = vmatprep.mubr.msk.f32.mxu0 %vm759_vm0, %v760_v1  ;;  %598 = vmatpush3.bf16.msra.mxu0 %v597_v54  ;;  %v278_v1 = vld [vmem:[#allocation8 + $0x48] sm:$0xff] }
  0x6e   :  { %599 = vmatprep.subr.bf16.mxu0 %v758_v0  ;;  %v609_v2 = vpack.c.bf16 %v278_v1, %v277_v63 }
  0x71   :  { %601 = vmatpush3.bf16.msra.mxu0 %v600_v56 }
  0x72   :  { %602 = vmatprep.subr.bf16.mxu0 %v758_v0 }
  0x75   :  { %604 = vmatpush3.bf16.msra.mxu0 %v603_v59 }
  0x76   :  { %605 = vmatprep.subr.bf16.mxu0 %v758_v0 }
  0x79   :  { %607 = vmatpush3.bf16.msra.mxu0 %v606_v62 }
  0x7a   :  { %608 = vmatprep.subr.bf16.mxu0 %v758_v0 }
  0x7d   :  { %610 = vmatpush3.bf16.msra.mxu0 %v609_v2 }
  0x7e   :  { %611 = vmatprep.subr.bf16.mxu0 %v758_v0 }
  0x81   :  { %613 = vmatpush3.bf16.msra.mxu0 %v612_v5 }
  0x82   :  { %614 = vmatprep.subr.bf16.mxu0 %v758_v0 }
  0x85   :  { %616 = vmatpush3.bf16.msra.mxu0 %v615_v8 }
  0x86   :  { %617 = vmatprep.subr.bf16.mxu0 %v758_v0 }
  0x89   :  { %619 = vmatpush3.bf16.msra.mxu0 %v618_v16 }
 0x13f   :  { %v170_v10 = vpop.f32.mrb[0].mxu0 }
 0x140   :  { %v171_v11 = vadd.f32 %v389_v9, %v170_v10  ;;  %v477_v12 = vpop.f32.mrb[1].mxu0 }
 0x142   :  { %v174_v13 = vmax.f32 %v171_v11, 0.0 }
 0x144   :  { %511 = vmatmul.mubr.f32.vlgmr.msra.gmra.mrb[0].mxu1 %v174_v13 }
 0x217   :  { %v264_v18 = vpop.f32.mrb[0].mxu1 }
 0x218   :  { %v265_v19 = vadd.f32 %v390_v17, %v264_v18  ;;  %v512_v0 = vpop.f32.mrb[1].mxu1 }
 0x21a   :  { %v268_v20 = vmax.f32 %v265_v19, 0.0 }
 0x21c   :  { %546 = vmatmul.mubr.f32.vlgmr.msra.gmra.mrb[2].mxu0 %v268_v20 }
 0x2ef   :  { %v358_v22 = vpop.f32.mrb[2].mxu0 }
 0x2f0   :  { %v359_v23 = vadd.f32 %v391_v21, %v358_v22  ;;  %v547_v24 = vpop.f32.mrb[3].mxu0 }
 0x2f2   :  { %362 = vmax.xlane.f32.xlu0 %v359_v23 }
 0x37f   :  { %v363_v25 = vpop.xlane.xlu0 %362 }
 0x380   :  { %v364_v26 = vsub.f32 %v359_v23, %v363_v25 }
 0x382   :  { %v365_v27 = vmul.f32 1.442695, %v364_v26 }
 0x384   :  { %630 = vpow2.f32 %v365_v27 }
 0x38e   :  { %v631_v28 = vpop.eup %630 }
 0x38f   :  { %367 = vadd.xlane.f32.xlu0 %v631_v28 }
 0x41c   :  { %v368_v29 = vpop.xlane.xlu0 %367 }
 0x41d   :  { %632 = vrcp.f32 %v368_v29 }
 0x427   :  { %v633_v30 = vpop.eup %632 }
 0x428   :  { %v370_v31 = vmul.f32 %v633_v30, %v631_v28 }
 0x42a   :  { %371 = vst [vmem:[#allocation10] sm:$0xff] %v370_v31 }
 0x42b   :  { %733 = shalt.err (!%p730_p8)
}
 0x42c   :  { %s734_s8 = scalar_lea.hbm %s917_s7, 128 }
 0x42d   :  { %p735_p9 = scmp.ne.s32.totalorder %s917_s7, %s734_s8  ;;  %p738_p10 = scmp.lt.u32.totalorder %s734_s8, %s917_s7 }
 0x42f   :  { %p740_p11 = pnand %p738_p10, %p735_p9 }
 0x431   :  { %743 = shalt.err (!%p740_p11)
}
 0x432   :  { %381 = dma.vmem_to_hbm [thread:$0]  %s379_s28, 128, %s917_s7, [#allocation4]  }
 0x433   :  { %750 = dma.done.wait [#allocation4], 128  }
 0x434   :  { %751 = vsyncadd [#allocation4], 4294967168 }
 0x435   :  { %385 = vsyncpa [#allocation3], 1 }
 0x436   :  { %386 = vsyncpa [#allocation6], 1 }
 0x437   :  { %387 = vsyncpa [#allocation9], 1 }
 0x438   :  { %388 = vsyncpa [#allocation4], 1 }

</bundles_post_ra>
